<compile_context>
chip_gen: v7x
topology: tpu7x:2x2x1
jax: 0.10.0
libtpu: 0.0.40
codegen_flags: <defaults>
</compile_context>

<pallas_src>
import functools

import jax
import jax.numpy as jnp
from jax.experimental import pallas as pl
from jax.experimental.pallas import tpu as pltpu

_LANES = 128
_TILE_ROWS = 2048                      # (2048, 128) f32 = 1 MiB per tile


@functools.lru_cache(maxsize=None)
def _whole_path_budget():
    """(max tensor f32-bytes for the fused whole-tensor path, vmem_limit_bytes)."""
    vmem_cap = 64 << 20                            # conservative default (v7x-like)
    try:
        vmem_cap = int(pltpu.get_tpu_info().vmem_capacity_bytes)
    except Exception:
        pass
    if vmem_cap >= (96 << 20):
        # v5e / v6e: 128 MiB VMEM + the slowest HBM -> the 2n-traffic whole path
        # (single tanh pass, single read) wins well past the old 2 MiB cut-off.
        # Peak VMEM is a handful of tensor-sized f32 temps, far below 96 MiB.
        return 8 << 20, 96 << 20
    # v7x: 64 MiB VMEM per TC and ~2.4x faster HBM -> the serialized whole path
    # loses to the tiled path beyond a couple MiB; keep threshold & limit small.
    return 2 << 20, 24 << 20


def _quant_whole_kernel(x_ref, o_ref, *, scale):
    """Whole (lane-padded) tensor resident in VMEM: global max + quantize, one pass."""
    inv_scale = 1.0 / scale
    x = x_ref[...].astype(jnp.float32)
    rows = x.shape[0]
    # max|tanh(x)| == tanh(max|x|): the reduction depends only on the cheap VPU
    # |x| stream (not the EUP tanh stream), and tanh is applied to a single small
    # slab before the final reduce (no scalar transcendental needed).
    if rows % 8 == 0:
        vmax = jnp.max(jnp.abs(x).reshape(rows // 8, 8, _LANES), axis=0)  # (8,128)
        m = jnp.max(jnp.tanh(vmax))
    else:
        # Tiny / oddly shaped tensors: keep the proven literal form.
        m = jnp.max(jnp.abs(jnp.tanh(x)))
    t = jnp.tanh(x)
    inv = (0.5 * inv_scale) / m                   # one divide total (all-zero -> NaN, like PyTorch)
    r = t * inv + (0.5 * inv_scale)               # r >= 0 => sign()/abs() unnecessary
    q = jnp.floor(r + 0.5)
    o_ref[...] = (2.0 * (q * scale) - 1.0).astype(o_ref.dtype)


def _quant_tiled_kernel(x_ref, o_ref, pmax_ref, inv_ref, *,
                        scale, valid_rows, tile_rows):
    """Fused two-phase kernel for large tensors: grid = (2 phases, ntiles)."""
    inv_scale = 1.0 / scale
    phase = pl.program_id(0)
    i = pl.program_id(1)
    ntiles = pl.num_programs(1)
    partial_last = (valid_rows % tile_rows) != 0      # static Python bool

    @pl.when(phase == 0)
    def _():
        @pl.when(i == 0)
        def _():
            pmax_ref[...] = jnp.zeros_like(pmax_ref)

        abs_x = jnp.abs(x_ref[...].astype(jnp.float32))
        if partial_last:
            # Rows past valid_rows in the edge tile hold garbage; zero them so
            # they cannot pollute the global max (|x| >= 0, so 0 is neutral).
            rem = valid_rows - i * tile_rows
            row_ids = jax.lax.broadcasted_iota(jnp.int32, abs_x.shape, 0)
            abs_x = jnp.where(row_ids < rem, abs_x, 0.0)
        # Fold the tile to one vreg: (tile_rows,128) -> (tile_rows//8, 8, 128) and
        # reduce the leading axis (pure elementwise max across vregs, no XLU),
        # then a single maximum() against the (8,128) running-max scratch.
        folded = jnp.max(abs_x.reshape(tile_rows // 8, 8, _LANES), axis=0)
        pmax_ref[...] = jnp.maximum(pmax_ref[...], folded)

        @pl.when(i == ntiles - 1)
        def _():
            # tanh applied ONCE, to a single vreg (monotone => commutes with max).
            m = jnp.max(jnp.tanh(pmax_ref[...]))
            # Phase-0 -> phase-1 scalar handoff. Kept in a (1,1) VMEM scratch
            # (proven lowering for vector-reduce -> scalar store); an SMEM scalar
            # would only shave one vector load per phase-1 tile.
            inv_ref[0, 0] = (0.5 * inv_scale) / m

    @pl.when(phase == 1)
    def _():
        t = jnp.tanh(x_ref[...].astype(jnp.float32))
        r = t * inv_ref[0, 0] + (0.5 * inv_scale)
        q = jnp.floor(r + 0.5)
        o_ref[...] = (2.0 * (q * scale) - 1.0).astype(o_ref.dtype)
        # Garbage rows of the edge tile produce garbage outputs here, but Pallas
        # drops out-of-bounds rows on writeback, so they never reach HBM.


def weight_quantizer(x, w_bits, *, tile_rows=_TILE_ROWS, force_tiled=False):
    """JAX/Pallas equivalent of micronet's WeightQuantizer.forward."""
    if w_bits == 32:
        return x
    assert w_bits != 1, "w_bits == 1 is not supported (matches the PyTorch assert)"

    orig_shape = x.shape
    orig_dtype = x.dtype
    n = x.size
    scale = 1.0 / float(2 ** w_bits - 1)
    flat = jnp.ravel(x)

    # Pad only to a lane (128) multiple. Large conv layers are almost always
    # lane-aligned already, so the (full-copy) pad + trailing slice are no-ops for
    # them; tile alignment is handled in-kernel by masking the partial edge tile.
    n_pad = pl.cdiv(n, _LANES) * _LANES
    if n_pad != n:
        flat = jnp.pad(flat, (0, n_pad - n))   # zeros: |tanh(0)| = 0 never changes the max
    rows = n_pad // _LANES
    x2d = flat.reshape(rows, _LANES)

    whole_limit_bytes, whole_vmem_limit = _whole_path_budget()
    # n*4: the kernel's temps are f32 regardless of input dtype.
    use_whole = (not force_tiled) and (n * 4 <= whole_limit_bytes)

    if use_whole:
        # Single fused kernel, whole tensor resident in VMEM (typical conv weights).
        out2d = pl.pallas_call(
            functools.partial(_quant_whole_kernel, scale=scale),
            out_shape=jax.ShapeDtypeStruct((rows, _LANES), orig_dtype),
            compiler_params=pltpu.CompilerParams(
                vmem_limit_bytes=whole_vmem_limit),
        )(x2d)
    else:
        # Fused two-phase pipelined kernel (3n HBM traffic) with large tiles.
        tile_rows = max(8, (tile_rows // 8) * 8)       # sublane multiple
        tr = min(tile_rows, pl.cdiv(rows, 8) * 8)      # don't exceed the tensor
        ntiles = pl.cdiv(rows, tr)
        out2d = pl.pallas_call(
            functools.partial(_quant_tiled_kernel, scale=scale,
                              valid_rows=rows, tile_rows=tr),
            out_shape=jax.ShapeDtypeStruct((rows, _LANES), orig_dtype),
            grid_spec=pltpu.PrefetchScalarGridSpec(
                num_scalar_prefetch=0,
                grid=(2, ntiles),
                in_specs=[pl.BlockSpec((tr, _LANES), lambda p, i: (i, 0))],
                # Phase 0 parks the output on block 0 (index never changes, never
                # flushed with garbage); phase 1 walks the blocks, so each output
                # block is DMA'd to HBM exactly once and always with valid data.
                out_specs=pl.BlockSpec((tr, _LANES), lambda p, i: (i * p, 0)),
                scratch_shapes=[
                    pltpu.VMEM((8, _LANES), jnp.float32),   # running |x| max: one vreg
                    pltpu.VMEM((1, 1), jnp.float32),        # precomputed inv scalar
                ],
            ),
            # Both axes must stay sequential: phase-0 -> phase-1 handoff plus the
            # cross-tile running max depend on grid order.
            # TODO(synk): on v7x (2 TensorCores) shard the tile axis across cores
            # with per-core partial maxima + a tiny cross-core combine for ~2x.
            compiler_params=pltpu.CompilerParams(
                dimension_semantics=("arbitrary", "arbitrary"),
                vmem_limit_bytes=32 * 1024 * 1024),
        )(x2d)

    out_flat = out2d.reshape(-1)
    if n_pad != n:
        out_flat = out_flat[:n]
    return out_flat.reshape(orig_shape)


def _reference(x, w_bits):
    """Pure-JAX reference mirroring the PyTorch formula literally."""
    if w_bits == 32:
        return x
    t = jnp.tanh(x.astype(jnp.float32))
    o = t / 2.0 / jnp.max(jnp.abs(t)) + 0.5
    s = 1.0 / float(2 ** w_bits - 1)
    r = o / s
    q = jnp.sign(r) * jnp.floor(jnp.abs(r) + 0.5)
    return (2.0 * (q * s) - 1.0).astype(x.dtype)


def _check(out, ref, scale, label):
    # Outputs live on a lattice with step 2*scale.  The kernel uses an algebraically
    # equivalent (hoisted) formulation, so exact rounding-boundary elements may land
    # one quantization step away from the literal reference; allow that on a tiny
    # fraction of elements.
    diff = jnp.abs(out.astype(jnp.float32) - ref.astype(jnp.float32))
    step = 2.0 * scale
    max_diff = float(jnp.max(diff))
    exact_frac = float(jnp.mean((diff < 1e-4).astype(jnp.float32)))
    assert max_diff <= 1.5 * step, (label, max_diff)
    assert exact_frac >= 0.95, (label, exact_frac)


if __name__ == "__main__":
    key = jax.random.PRNGKey(0)
    w_bits = 8
    scale = 1.0 / float(2 ** w_bits - 1)

    # Conv-weight-like tensor (OIHW), lane-aligned size: 2*4*16*16 = 2048 elems.
    w = jax.random.normal(key, (2, 4, 16, 16), dtype=jnp.float32) * 0.5
    out_whole = jax.block_until_ready(weight_quantizer(w, w_bits))
    ref = _reference(w, w_bits)
    assert out_whole.shape == w.shape and out_whole.dtype == w.dtype
    _check(out_whole, ref, scale, "whole")

    # Tiled (large-tensor) fused path on the same data with tiny tiles.
    out_tiled = jax.block_until_ready(
        weight_quantizer(w, w_bits, tile_rows=8, force_tiled=True))
    _check(out_tiled, ref, scale, "tiled")
    _check(out_tiled, out_whole, scale, "tiled-vs-whole")

    # Tiled path with a partial (masked) edge tile: 2*4*16*20 = 2560 -> 20 rows,
    # 3 tiles of 8 rows, last tile has only 4 valid rows.
    w3 = jax.random.normal(jax.random.PRNGKey(2), (2, 4, 16, 20), dtype=jnp.float32) * 0.5
    out3_tiled = jax.block_until_ready(
        weight_quantizer(w3, w_bits, tile_rows=8, force_tiled=True))
    _check(out3_tiled, _reference(w3, w_bits), scale, "tiled-masked-edge")
    out3_whole = jax.block_until_ready(weight_quantizer(w3, w_bits))
    _check(out3_whole, out3_tiled, scale, "whole-vs-tiled-masked")

    # Non-lane-aligned shape (original micronet weight shape) exercises padding.
    w2 = jax.random.normal(jax.random.PRNGKey(1), (4, 4, 3, 3), dtype=jnp.float32) * 0.5
    out2 = jax.block_until_ready(weight_quantizer(w2, w_bits))
    _check(out2, _reference(w2, w_bits), scale, "padded")

    # w_bits == 32 is an identity pass-through.
    assert bool(jnp.all(weight_quantizer(w, 32) == w))

    print("KERNEL_OK")
</pallas_src>

<mosaic_0001>
module attributes {stable_mosaic.version = 11 : i64} {
  func.func @_quant_whole_kernel(%arg0: memref<16x128xf32, #tpu.memory_space<vmem>>, %arg1: memref<16x128xf32, #tpu.memory_space<vmem>>) attributes {dimension_semantics = [], scalar_prefetch = 0 : i64, scratch_operands = 0 : i64, tpu.core_type = #tpu.core_type<tc>} {
    %c0 = arith.constant 0 : index
    %c0_0 = arith.constant 0 : index
    %0 = vector.load %arg0[%c0, %c0_0] : memref<16x128xf32, #tpu.memory_space<vmem>>, vector<16x128xf32>
    %1 = math.absf %0 : vector<16x128xf32>
    %2 = vector.shape_cast %1 : vector<16x128xf32> to vector<2x8x128xf32>
    %cst = arith.constant dense<0xFF800000> : vector<8x128xf32>
    %3 = vector.multi_reduction <maximumf>, %2, %cst [0] : vector<2x8x128xf32> to vector<8x128xf32>
    %4 = math.tanh %3 : vector<8x128xf32>
    %5 = vector.shape_cast %4 : vector<8x128xf32> to vector<1x8x128xf32>
    %cst_1 = arith.constant dense<0xFF800000> : vector<1xf32>
    %6 = vector.multi_reduction <maximumf>, %5, %cst_1 [1, 2] : vector<1x8x128xf32> to vector<1xf32>
    %7 = vector.shape_cast %6 : vector<1xf32> to vector<1x1x1xf32>
    %8 = vector.extract %7[0, 0, 0] : f32 from vector<1x1x1xf32>
    %9 = math.tanh %0 : vector<16x128xf32>
    %cst_2 = arith.constant 1.275000e+02 : f32
    %10 = arith.divf %cst_2, %8 : f32
    %11 = vector.broadcast %10 : f32 to vector<16x128xf32>
    %12 = arith.mulf %9, %11 : vector<16x128xf32>
    %cst_3 = arith.constant 1.275000e+02 : f32
    %13 = vector.broadcast %cst_3 : f32 to vector<16x128xf32>
    %14 = arith.addf %12, %13 : vector<16x128xf32>
    %cst_4 = arith.constant 5.000000e-01 : f32
    %15 = vector.broadcast %cst_4 : f32 to vector<16x128xf32>
    %16 = arith.addf %14, %15 : vector<16x128xf32>
    %17 = math.floor %16 : vector<16x128xf32>
    %cst_5 = arith.constant 0.00392156886 : f32
    %18 = vector.broadcast %cst_5 : f32 to vector<16x128xf32>
    %19 = arith.mulf %17, %18 : vector<16x128xf32>
    %cst_6 = arith.constant 2.000000e+00 : f32
    %20 = vector.broadcast %cst_6 : f32 to vector<16x128xf32>
    %21 = arith.mulf %20, %19 : vector<16x128xf32>
    %cst_7 = arith.constant 1.000000e+00 : f32
    %22 = vector.broadcast %cst_7 : f32 to vector<16x128xf32>
    %23 = arith.subf %21, %22 : vector<16x128xf32>
    %c0_8 = arith.constant 0 : index
    %c0_9 = arith.constant 0 : index
    %24 = vector.load %arg1[%c0_8, %c0_9] : memref<16x128xf32, #tpu.memory_space<vmem>>, vector<16x128xf32>
    tpu.vector_store %arg1[%c0_8, %c0_9], %23 {strides = array<i32>} : memref<16x128xf32, #tpu.memory_space<vmem>>, vector<16x128xf32>,
    return
  }
}

</mosaic_0001>

<bundles_post_ra>
// kernel: tpu_custom_call.1
= control target key start
LH: loop header
LB: loop body
LE: loop exit
PB: predicated region body
PF: predicated region fallthrough
CT: control target
= control target key end

     0   :  { %6 = vsyncpa [#allocation3], 0  ;;  %s188_s0 = inlined_call_operand.hbm [shape: f32[16,128], index: 0, kind: input, shape index: {}]   ;;  %s189_s1 = inlined_call_operand.hbm [shape: f32[16,128], index: 1, kind: output, shape index: {}]  }
   0x1   :  { %7 = vsyncpa [#allocation4], 0  ;;  %s144_s6 = smov [#allocation2]   ;;  %s96_s10 = scalar_lea.hbm %s188_s0, 256 }
   0x2   :  { %s13_s7 = sshll.u32 %s144_s6, 4  ;;  %p97_p0 = scmp.ne.s32.totalorder %s188_s0, %s96_s10  ;;  %s14_s7 = int_to_ptr.vmem [resolvable:$true] %s13_s7 }
   0x3   :  { %p100_p1 = scmp.lt.u32.totalorder %s96_s10, %s188_s0 }
   0x5   :  { %p102_p2 = pnand %p100_p1, %p97_p0 }
   0x7   :  { %105 = shalt.err (!%p102_p2)
}
   0x8   :  { %s106_s15 = scalar_lea.vmem %s14_s7, 256  ;;  %p111_p4 = scmp.lt.s32.totalorder %s14_s7, %s14_s7 }
   0x9   :  { %p107_p3 = scmp.ne.s32.totalorder %s14_s7, %s106_s15  ;;  %p112_p5 = scmp.lt.s32.totalorder %s106_s15, %s106_s15 }
   0xb   :  { %p113_p6 = por %p112_p5, %p111_p4 }
   0xd   :  { %p114_p7 = pnand %p113_p6, %p107_p3 }
   0xf   :  { %117 = shalt.err (!%p114_p7)
}
  0x10   :  { %s145_s16 = smov 128   ;;  %s146_s17 = smov 8  }
  0x11   :  { %19 = dma.hbm_to_vmem [thread:$0]  %s188_s0, 256, %s14_s7, [#allocation3], %s145_s16, %s145_s16, %s146_s17  }
  0x12   :  { %140 = dma.done.wait [#allocation3], 256  }
  0x13   :  { %141 = vsyncadd [#allocation3], 4294967040  ;;  %v23_v0 = vld [vmem:[#allocation2] sm:$0xff]  ;;  %v24_v1 = vld [vmem:[#allocation2 + $0x8] sm:$0xff]  ;;  %s147_s22 = smov [#allocation5]  }
  0x14   :  { %v25_v2 = vand.u32 2147483647, %v23_v0  ;;  %v26_v3 = vand.u32 2147483647, %v24_v1  ;;  %s66_s23 = sshll.u32 %s147_s22, 4  ;;  %s67_s23 = int_to_ptr.vmem [resolvable:$true] %s66_s23 }
  0x15   :  { %s118_s24 = scalar_lea.vmem %s67_s23, 256  ;;  %p123_p9 = scmp.lt.s32.totalorder %s67_s23, %s67_s23 }
  0x16   :  { %v27_v4 = vmax.f32.f32 %v25_v2, %v26_v3  ;;  %p119_p8 = scmp.ne.s32.totalorder %s67_s23, %s118_s24  ;;  %p124_p10 = scmp.lt.s32.totalorder %s118_s24, %s118_s24 }
  0x18   :  { %88 = vtanh.f32 %v27_v4  ;;  %p125_p11 = por %p124_p10, %p123_p9 }
  0x1a   :  { %p126_p12 = pnand %p125_p11, %p119_p8 }
  0x22   :  { %v89_v5 = vpop.eup %88 }
  0x23   :  { %29 = vmax.xlane.f32.xlu0 %v89_v5 }
  0xb0   :  { %v30_v6 = vpop.xlane.xlu0 %29 }
  0xb1   :  { %v31_v7 = vrot.slane %v30_v6, 4 }
  0xb3   :  { %v32_v8 = vmax.f32 %v30_v6, %v31_v7 }
  0xb5   :  { %v33_v9 = vrot.slane %v32_v8, 2 }
  0xb7   :  { %v34_v10 = vmax.f32 %v32_v8, %v33_v9 }
  0xb9   :  { %v35_v11 = vrot.slane %v34_v10, 1 }
  0xbb   :  { %v36_v12 = vmax.f32 %v34_v10, %v35_v11 }
  0xbd   :  { %80 = vpush %v36_v12 }
  0xee   :  { %s81_s20 = spop %80 }
  0xef   :  { %v40_v13 = vstv %s81_s20 }
  0xf0   :  { %90 = vrcp.f32 %v40_v13 }
  0xf1   :  { %92 = vtanh.f32 %v23_v0 }
  0xf2   :  { %94 = vtanh.f32 %v24_v1 }
  0xfa   :  { %v91_v14 = vpop.eup %90 }
  0xfb   :  { %82 = vpush %v91_v14  ;;  %v93_v15 = vpop.eup %92 }
  0xfc   :  { %v95_v16 = vpop.eup %94 }
 0x12c   :  { %s83_s0 = spop %82 }
 0x12d   :  { %s43_s21 = smul.f32 127.5, %s83_s0 }
 0x12f   :  { %v44_v17 = vstv %s43_s21 }
 0x130   :  { %v45_v18 = vmul.f32 %v93_v15, %v44_v17  ;;  %v46_v19 = vmul.f32 %v95_v16, %v44_v17 }
 0x132   :  { %v47_v20 = vadd.f32 127.5, %v45_v18  ;;  %v48_v21 = vadd.f32 127.5, %v46_v19 }
 0x134   :  { %v49_v22 = vadd.f32 0.5, %v47_v20  ;;  %v50_v23 = vadd.f32 0.5, %v48_v21 }
 0x136   :  { %v51_v24 = vfloor.f32 %v49_v22  ;;  %v52_v25 = vfloor.f32 %v50_v23 }
 0x138   :  { %v53_v26 = vmul.f32 0.003921569, %v51_v24  ;;  %v54_v27 = vmul.f32 0.003921569, %v52_v25 }
 0x13a   :  { %v55_v28 = vmul.f32 2.0, %v53_v26  ;;  %v56_v29 = vmul.f32 2.0, %v54_v27 }
 0x13c   :  { %v78_v30 = vadd.f32 -1.0, %v55_v28  ;;  %v79_v31 = vadd.f32 -1.0, %v56_v29 }
 0x13e   :  { %59 = vst [vmem:[#allocation5] sm:$0xff] %v78_v30  ;;  %60 = vst [vmem:[#allocation5 + $0x8] sm:$0xff] %v79_v31 }
 0x13f   :  { %129 = shalt.err (!%p126_p12)
}
 0x140   :  { %s130_s27 = scalar_lea.hbm %s189_s1, 256 }
 0x141   :  { %p131_p13 = scmp.ne.s32.totalorder %s189_s1, %s130_s27  ;;  %p134_p0 = scmp.lt.u32.totalorder %s130_s27, %s189_s1 }
 0x143   :  { %p136_p1 = pnand %p134_p0, %p131_p13 }
 0x145   :  { %139 = shalt.err (!%p136_p1)
}
 0x146   :  { %72 = dma.vmem_to_hbm [thread:$0]  %s67_s23, 256, %s189_s1, [#allocation4], %s145_s16, %s145_s16, %s146_s17  }
 0x147   :  { %142 = dma.done.wait [#allocation4], 256  }
 0x148   :  { %143 = vsyncadd [#allocation4], 4294967040 }
 0x149   :  { %76 = vsyncpa [#allocation3], 1 }
 0x14a   :  { %77 = vsyncpa [#allocation4], 1 }

</bundles_post_ra>
